<compile_context>
chip_gen: v7x
topology: tpu7x:2x2x1
jax: 0.10.0
libtpu: 0.0.40
codegen_flags: <defaults>
</compile_context>

<pallas_src>
import jax
import jax.numpy as jnp
from jax.experimental import pallas as pl
from jax.experimental.pallas import tpu as pltpu


SUBLANE = 8  # f32 sublane quantum


def _round_up(a, b):
    return ((a + b - 1) // b) * b


# ----------------------------- Pallas kernel --------------------------------
def _koopman_fused_kernel(x_ref, w_ref, o_ref):
    # Single MXU matmul per row tile: y = x_tile @ W (W = V @ K pre-fused),
    # f32 accumulation, f32 output (bf16 intentionally not used).
    o_ref[...] = jnp.dot(
        x_ref[...], w_ref[...], preferred_element_type=jnp.float32
    ).astype(o_ref.dtype)


# --------------------------- layout / tiling helpers -------------------------
def _packing(D):
    """Lane-dense packing params.

    Packs P logical rows of (zero-padded) width D_pad into one packed row of
    width Dw = P * D_pad, with Dw always a multiple of 128 so every load/store
    is 128-lane dense.
    """
    if D >= 128:
        D_pad = _round_up(D, 128)
        P = 1
    else:
        D_pad = 1
        while D_pad < D:           # divisors of 128 are powers of two
            D_pad *= 2
        P = 128 // D_pad
    return P, D_pad, D_pad * P


def widen_operator(W, dtype=jnp.float32):
    """(D, D) fused operator -> (Dw, Dw) lane-widened block-diagonal weight."""
    D = W.shape[0]
    P, D_pad, _ = _packing(D)
    Wp = W.astype(dtype)
    if D_pad != D:
        Wp = jnp.pad(Wp, ((0, D_pad - D), (0, D_pad - D)))
    if P > 1:
        # block_diag(W,...,W): packed row [r0|r1|..] @ W_wide = [r0@W|r1@W|..]
        Wp = jnp.kron(jnp.eye(P, dtype=dtype), Wp)
    return Wp


def _choose_row_tile(R, tm, Dw, itemsize=4):
    """Row tile: big enough to amortize per-step overhead, small enough for VMEM,
    and never a single grid step when two tiles are possible (v7x megacore)."""
    # Keep the 3-deep x + y pipeline buffers within ~12 MiB so defaults suffice
    # on v5e (16 MiB scoped default); v6e/v7x defaults (32 MiB) are roomier.
    budget = 12 * 1024 * 1024
    per_row = Dw * itemsize * 6                    # 3-deep input + 3-deep output
    cap = max(SUBLANE, (budget // per_row) // SUBLANE * SUBLANE)
    tm = max(SUBLANE, min(tm, cap) // SUBLANE * SUBLANE)
    if R >= 2 * SUBLANE:
        # >= 2 grid steps whenever possible so "parallel" row tiles can be
        # sharded across both v7x TensorCores.
        return min(tm, _round_up(pl.cdiv(R, 2), SUBLANE))
    return SUBLANE


def _spec(shape, index_map, depth=None):
    """BlockSpec with optional deeper pipelining; falls back gracefully."""
    if depth is not None and depth > 2:
        try:
            return pl.BlockSpec(shape, index_map, pipeline_mode=pl.Buffered(depth))
        except TypeError:
            pass
    return pl.BlockSpec(shape, index_map)


# ------------------------------- kernel wrappers ------------------------------
def koopman_matmul_packed(x_packed, w_wide, *, tm=2048):
    """y_packed = x_packed @ w_wide on already lane-packed (R, Dw) data.

    Callers that keep x/y in the packed layout end-to-end pay zero wrapper HBM
    passes; this is just the pallas_call.
    """
    R, Dw = x_packed.shape
    assert w_wide.shape == (Dw, Dw) and Dw % 128 == 0

    tr = _choose_row_tile(R, tm, Dw, jnp.dtype(x_packed.dtype).itemsize)
    n_steps = pl.cdiv(R, tr)
    R_pad = n_steps * tr
    if R_pad != R:
        x_packed = jnp.pad(x_packed, ((0, R_pad - R), (0, 0)))

    out_dtype = x_packed.dtype
    depth = 3 if n_steps >= 3 else None            # deeper pipelining only helps
                                                   # when the grid has many steps
    cost = pl.CostEstimate(
        flops=2 * R_pad * Dw * Dw,
        transcendentals=0,
        bytes_accessed=(
            R_pad * Dw * jnp.dtype(x_packed.dtype).itemsize
            + Dw * Dw * jnp.dtype(w_wide.dtype).itemsize
            + R_pad * Dw * jnp.dtype(out_dtype).itemsize
        ),
    )
    # Don't shard a 1-step grid across TensorCores.
    dim_sem = ("parallel",) if n_steps > 1 else ("arbitrary",)

    y_packed = pl.pallas_call(
        _koopman_fused_kernel,
        out_shape=jax.ShapeDtypeStruct((R_pad, Dw), out_dtype),
        grid_spec=pltpu.PrefetchScalarGridSpec(
            num_scalar_prefetch=0,
            grid=(n_steps,),
            in_specs=[
                _spec((tr, Dw), lambda i: (i, 0), depth),     # streamed x tile
                pl.BlockSpec((Dw, Dw), lambda i: (0, 0)),     # resident fused W
            ],
            out_specs=_spec((tr, Dw), lambda i: (i, 0), depth),
        ),
        compiler_params=pltpu.CompilerParams(dimension_semantics=dim_sem),
        cost_estimate=cost,
    )(x_packed, w_wide)

    return y_packed[:R] if R_pad != R else y_packed


def koopman_forward_pallas(x_dic, W=None, *, w_wide=None, tm=2048):
    """y = x_dic @ W with W = V @ K pre-fused, shape (D, D).

    Pass either W (lane-widened here) or a precomputed `w_wide` from
    widen_operator(W).  Intended to be called under jit so the pad + packing
    reshape (and the output unpack) fuse into a single relayout pass each way.
    """
    M, D = x_dic.shape
    P, D_pad, Dw = _packing(D)
    if w_wide is None:
        assert W is not None and W.shape == (D, D)
        w_wide = widen_operator(W, dtype=x_dic.dtype)
    assert w_wide.shape == (Dw, Dw)

    # Row/column padding so packed rows divide the row tile and lanes are dense.
    R = pl.cdiv(M, P)
    tr = _choose_row_tile(R, tm, Dw, jnp.dtype(x_dic.dtype).itemsize)
    R_pad = _round_up(R, tr)
    M_pad = R_pad * P

    x = x_dic
    if (M_pad, D_pad) != (M, D):
        x = jnp.pad(x, ((0, M_pad - M), (0, D_pad - D)))
    x_packed = x.reshape(R_pad, Dw)

    y_packed = koopman_matmul_packed(x_packed, w_wide, tm=tm)

    y = y_packed.reshape(M_pad, D_pad)
    if (M_pad, D_pad) != (M, D):
        y = y[:M, :D]
    return y


# ------------------------ parameter / operator glue --------------------------
def build_block_diagonal_K(omega, koopman_dim, sample_step):
    """BlockDiagonalKoopman.forward_K: 2x2 rotation blocks from omega*sample_step.

    Assembled scatter-free: (nb,2,2) rotation blocks outer-multiplied with
    eye(nb) in a single einsum.
    TODO(synk): verify the rotation sign convention (K[2i,2i+1]=-sin,
    K[2i+1,2i]=+sin) against the PyTorch BlockDiagonalKoopman implementation.
    """
    theta = omega.astype(jnp.float32) * jnp.float32(sample_step)
    c, s = jnp.cos(theta), jnp.sin(theta)
    nb = omega.shape[0]
    blocks = jnp.stack(
        [jnp.stack([c, -s], axis=-1),        # row 0: [ cos, -sin]
         jnp.stack([s, c], axis=-1)],        # row 1: [ sin,  cos]
        axis=-2,
    )                                         # (nb, 2, 2)
    K = jnp.einsum("nab,nm->namb", blocks, jnp.eye(nb, dtype=jnp.float32))
    K = K.reshape(2 * nb, 2 * nb)
    if koopman_dim % 2 == 1:                  # trailing 1x1 identity block
        K = jnp.pad(K, ((0, 1), (0, 1)))
        K = K.at[-1, -1].set(1.0)
    return K


class TimeEmbeddingBlockDiagonalKoopmanJAX:
    """Deterministically-initialized JAX counterpart (forward path only)."""

    def __init__(self, dictionary_dim, x_dim, u_dim, num_blocks, key):
        self.dictionary_dim = dictionary_dim
        self.x_dim = x_dim
        self.u_dim = u_dim
        self.num_blocks = num_blocks          # only used by TrainableDictionary in the original
        self.koopman_dim = dictionary_dim + 1 + x_dim
        k_v, k_w = jax.random.split(key)
        # BlockDiagonalKoopman parameters: V (D, D) and rotation angles omega.
        self.V = jax.random.normal(
            k_v, (self.koopman_dim, self.koopman_dim), jnp.float32) * 0.1
        self.omega = jax.random.normal(
            k_w, (self.koopman_dim // 2,), jnp.float32) * 0.1
        self._w_wide_cache = {}
        # TODO(synk): TrainableDictionary (used only by dictionary_forward /
        # dictionary_V, not by forward) is not reproduced here.

    def _build_w_wide(self, sample_step):
        K = build_block_diagonal_K(self.omega, self.koopman_dim, sample_step)
        # Fuse (x @ V) @ K -> x @ (V @ K): trivial DxD product done once, so the
        # kernel is a single MXU dot against one resident weight.
        W = self.V @ K
        return widen_operator(W)

    def precompute(self, sample_step=10):
        """Hoist W = V @ K and its lane-widened kron form out of the hot path."""
        self._w_wide_cache[sample_step] = jax.block_until_ready(
            self._build_w_wide(sample_step))

    def forward(self, x_dic, u_dim=None, sample_step=10):
        w_wide = self._w_wide_cache.get(sample_step)
        if w_wide is None:                    # fallback (not hoisted)
            w_wide = self._build_w_wide(sample_step)
        return koopman_forward_pallas(x_dic, w_wide=w_wide)


# ---------------------------------- main -------------------------------------
if __name__ == "__main__":
    key = jax.random.PRNGKey(0)
    k_param, k_x = jax.random.split(key)

    dictionary_dim, x_dim, u_dim, num_blocks = 22, 9, 3, 4   # koopman_dim = 32
    module = TimeEmbeddingBlockDiagonalKoopmanJAX(
        dictionary_dim, x_dim, u_dim, num_blocks, k_param)
    module.precompute(sample_step=10)   # hoist W = V @ K (+ lane widening)

    M = 100  # flattened batch * time samples (exercises row padding 100 -> 128)
    x_dic = jax.random.normal(k_x, (M, module.koopman_dim), jnp.float32)

    # jit so the pack/unpack relayouts fuse with the pallas_call operands.
    fwd = jax.jit(lambda xd: module.forward(xd, u_dim, sample_step=10))
    y = jax.block_until_ready(fwd(x_dic))

    # Pure-JAX f32 reference of the original (x @ V) @ K semantics.
    K_ref = build_block_diagonal_K(module.omega, module.koopman_dim, 10)
    y_ref = (x_dic @ module.V) @ K_ref
    assert y.shape == (M, module.koopman_dim)
    assert y.dtype == x_dic.dtype
    # f32 throughout; only the rounding order changes due to the V@K fusion.
    assert jnp.allclose(y, y_ref, atol=1e-4, rtol=1e-4), \
        float(jnp.max(jnp.abs(y - y_ref)))

    print("KERNEL_OK")
</pallas_src>

<mosaic_0001>
module attributes {stable_mosaic.version = 11 : i64} {
  func.func @_koopman_fused_kernel(%arg0: i32, %arg1: memref<16x128xf32, #tpu.memory_space<vmem>>, %arg2: memref<128x128xf32, #tpu.memory_space<vmem>>, %arg3: memref<16x128xf32, #tpu.memory_space<vmem>>) attributes {dimension_semantics = [#tpu.dimension_semantics<parallel>], iteration_bounds = array<i64: 2>, scalar_prefetch = 0 : i64, scratch_operands = 0 : i64, tpu.core_type = #tpu.core_type<tc>, window_params = [{transform_indices = @transform_0, window_bounds = array<i64: 16, 128>}, {pipeline_mode = #tpu.pipeline_mode<synchronous>, transform_indices = @transform_1, window_bounds = array<i64: 128, 128>}, {transform_indices = @transform_2, window_bounds = array<i64: 16, 128>}]} {
    %c0 = arith.constant 0 : index
    %c0_0 = arith.constant 0 : index
    %0 = vector.load %arg1[%c0, %c0_0] : memref<16x128xf32, #tpu.memory_space<vmem>>, vector<16x128xf32>
    %c0_1 = arith.constant 0 : index
    %c0_2 = arith.constant 0 : index
    %1 = vector.load %arg2[%c0_1, %c0_2] : memref<128x128xf32, #tpu.memory_space<vmem>>, vector<128x128xf32>
    %cst = arith.constant dense<0.000000e+00> : vector<16x128xf32>
    %2 = tpu.matmul %0, %1, %cst {dimension_numbers = #tpu.dot_dimension_numbers<[1], [0], [0], [1], [0, 0, 1, 1], [], []>} : vector<16x128xf32>, vector<128x128xf32>, vector<16x128xf32> -> vector<16x128xf32>
    %c0_3 = arith.constant 0 : index
    %c0_4 = arith.constant 0 : index
    %3 = vector.load %arg3[%c0_3, %c0_4] : memref<16x128xf32, #tpu.memory_space<vmem>>, vector<16x128xf32>
    tpu.vector_store %arg3[%c0_3, %c0_4], %2 {strides = array<i32>} : memref<16x128xf32, #tpu.memory_space<vmem>>, vector<16x128xf32>,
    return
  }
  func.func @transform_0(%arg0: i32) -> (i32, i32) {
    %c0_i32 = arith.constant 0 : i32
    %c0_i32_0 = arith.constant 0 : i32
    return %arg0, %c0_i32 : i32, i32
  }
  func.func @transform_1(%arg0: i32) -> (i32, i32) {
    %c0_i32 = arith.constant 0 : i32
    %c0_i32_0 = arith.constant 0 : i32
    %c0_i32_1 = arith.constant 0 : i32
    return %c0_i32, %c0_i32_0 : i32, i32
  }
  func.func @transform_2(%arg0: i32) -> (i32, i32) {
    %c0_i32 = arith.constant 0 : i32
    %c0_i32_0 = arith.constant 0 : i32
    return %arg0, %c0_i32 : i32, i32
  }
}

</mosaic_0001>

<bundles_post_ra>
// kernel: _lambda_.1
= control target key start
LH: loop header
LB: loop body
LE: loop exit
PB: predicated region body
PF: predicated region fallthrough
CT: control target
= control target key end

     0   :  { %s425_s9 = smov 0   ;;  %s497_s0 = inlined_call_operand.vmem [shape: f32[32,128], index: 0, kind: input, shape index: {}]   ;;  %s498_s1 = inlined_call_operand.vmem [shape: f32[128,128], index: 1, kind: input, shape index: {}]   ;;  %s499_s2 = inlined_call_operand.vmem [shape: f32[32,128], index: 2, kind: output, shape index: {}]  }
   0x1 LB: > { %s298_s10 = sadd.s32 4294967295, %s408_s9   ;;  %p302_p0 = scmp.ge.s32.totalorder %s408_s9, 1  ;;  %s408_s9 = sphi %s425_s9, %s12_s9  }
   0x2   : > { %p113_p1 = scmp.lt.s32.totalorder %s408_s9, 3 }
   0x4   : > { %p114_p2 = pnand %p302_p0, %p113_p1 }
   0x5   : > { %v149_v0 = vld [vmem:[%s498_s1] sm:$0xff] (!%p114_p2)  ;;  %v150_v1 = vld [vmem:[%s498_s1 + $0x8] sm:$0xff] (!%p114_p2)  ;;  %v151_v2 = vld [vmem:[%s498_s1 + $0x10] sm:$0xff] (!%p114_p2)  ;;  %s303_s17 = sshll.u32 (!%p114_p2), %s298_s10, 1 }
   0x6   : > { %117 = sbr.rel (%p114_p2) target bundleno = 254 (0xfe), region = 28  ;;  %v362_v3 = vpack.c.bf16 (!%p114_p2), %v150_v1, %v149_v0  ;;  %v152_v4 = vld [vmem:[%s498_s1 + $0x18] sm:$0xff] (!%p114_p2)  ;;  %p136_p3 = scmp.lt.s32.totalorder (!%p114_p2), %s303_s17, 3  ;;  %v153_v6 = vld [vmem:[%s498_s1 + $0x20] sm:$0xff] (!%p114_p2)  ;;  %v154_v7 = vld [vmem:[%s498_s1 + $0x28] sm:$0xff] (!%p114_p2) }
   0x7   : > { %v366_v5 = vpack.c.bf16 (!%p114_p2), %v152_v4, %v151_v2  ;;  %v370_v8 = vpack.c.bf16 (!%p114_p2), %v154_v7, %v153_v6  ;;  %v155_v9 = vld [vmem:[%s498_s1 + $0x30] sm:$0xff] (!%p114_p2)  ;;  %v156_v10 = vld [vmem:[%s498_s1 + $0x38] sm:$0xff] (!%p114_p2)  ;;  %v157_v13 = vld [vmem:[%s498_s1 + $0x40] sm:$0xff] (!%p114_p2) }
   0x8   : > { %363 = vmatprep.subr.bf16.mxu0 (!%p114_p2), %v362_v3  ;;  %v374_v12 = vpack.c.bf16 (!%p114_p2), %v156_v10, %v155_v9  ;;  %v158_v14 = vld [vmem:[%s498_s1 + $0x48] sm:$0xff] (!%p114_p2)  ;;  %v159_v16 = vld [vmem:[%s498_s1 + $0x50] sm:$0xff] (!%p114_p2)  ;;  %v160_v17 = vld [vmem:[%s498_s1 + $0x58] sm:$0xff] (!%p114_p2) }
   0x9   : > { %365 = vmatpush3.bf16.msra.mxu0 (!%p114_p2), %v362_v3  ;;  %v378_v15 = vpack.c.bf16 (!%p114_p2), %v158_v14, %v157_v13  ;;  %v382_v18 = vpack.c.bf16 (!%p114_p2), %v160_v17, %v159_v16  ;;  %v161_v19 = vld [vmem:[%s498_s1 + $0x60] sm:$0xff] (!%p114_p2)  ;;  %v162_v20 = vld [vmem:[%s498_s1 + $0x68] sm:$0xff] (!%p114_p2)  ;;  %v163_v22 = vld [vmem:[%s498_s1 + $0x70] sm:$0xff] (!%p114_p2) }
   0xa   : > { %367 = vmatprep.subr.bf16.mxu0 (!%p114_p2), %v366_v5  ;;  %v386_v21 = vpack.c.bf16 (!%p114_p2), %v162_v20, %v161_v19  ;;  %v164_v23 = vld [vmem:[%s498_s1 + $0x78] sm:$0xff] (!%p114_p2) }
   0xb   : > { %v390_v24 = vpack.c.bf16 (!%p114_p2), %v164_v23, %v163_v22 }
   0xd   : > { %s501_s17 = smov (!%p136_p3, %s303_s17), 3  ;;  %369 = vmatpush3.bf16.msra.mxu0 %v366_v5 }
   0xe   : > { %s304_s24 = sshll.u32 %s501_s17, 3  ;;  %371 = vmatprep.subr.bf16.mxu0 %v370_v8 }
   0xf   : > { %s139_s3 = scalar_lea.vmem %s497_s0, %s304_s24  ;;  %s145_s25 = scalar_lea.vmem %s499_s2, %s304_s24 }
  0x10   : > { %v147_v11 = vld [vmem:[%s139_s3] sm:$0xff]  ;;  %v148_v25 = vld [vmem:[%s139_s3 + $0x8] sm:$0xff] }
  0x11   : > { %359 = vmatprep.mubr.f32.mxu0 %v147_v11  ;;  %373 = vmatpush3.bf16.msra.mxu0 %v370_v8 }
  0x12   : > { %375 = vmatprep.subr.bf16.mxu0 %v374_v12 }
  0x15   : > { %377 = vmatpush3.bf16.msra.mxu0 %v374_v12 }
  0x16   : > { %379 = vmatprep.subr.bf16.mxu0 %v378_v15 }
  0x19   : > { %381 = vmatpush3.bf16.msra.mxu0 %v378_v15 }
  0x1a   : > { %383 = vmatprep.subr.bf16.mxu0 %v382_v18 }
  0x1d   : > { %385 = vmatpush3.bf16.msra.mxu0 %v382_v18 }
  0x1e   : > { %387 = vmatprep.subr.bf16.mxu0 %v386_v21 }
  0x21   : > { %389 = vmatpush3.bf16.msra.mxu0 %v386_v21 }
  0x22   : > { %391 = vmatprep.subr.bf16.mxu0 %v390_v24 }
  0x25   : > { %393 = vmatpush3.bf16.msra.mxu0 %v390_v24 }
  0x28   : > { %360 = vmatmul.mubr.f32.vlgmr.msra.gmra.mrb[0].mxu0 %v148_v25 }
  0xfb   : > { %v361_v26 = vpop.f32.mrb[0].mxu0 }
  0xfc   : > { %v231_v27 = vpop.f32.mrb[1].mxu0  ;;  %241 = vst [vmem:[%s145_s25 + $0x8] sm:$0xff] %v361_v26 }
  0xfd   : > { %240 = vst [vmem:[%s145_s25] sm:$0xff] %v231_v27 }
  0xfe PF: > { %s12_s9 = sadd.s32 1, %s408_s9  }
  0xff   : > { %p9_p4 = scmp.ge.s32.totalorder %s12_s9, 4  }
 0x101   :  { %11 = sbr.rel (!%p9_p4) target bundleno = 1 (0x1), region = 58 }

</bundles_post_ra>
